<compile_context>
chip_gen: v6e
topology: v6e:2x2x1
jax: 0.10.0
libtpu: 0.0.40
codegen_flags: <defaults>
</compile_context>

<pallas_src>
import jax
import jax.numpy as jnp
from jax.experimental import pallas as pl
from jax.experimental.pallas import tpu as pltpu


def rnn_cell_kernel(a_ref, mask_ref, w_ref, b_ref, o_ref):
    """o = tanh( (a * mask) @ W_tile + b_tile ) for one output-column tile.

    a    : (B, E+H) f32   -- [x, h] concatenated on the lane axis
    mask : (B, E+H) f32   -- 1.0 over x columns; 0 or 1/keep over h columns
    w    : (E+H, tn) bf16 -- packed [Wx; Wh]^T column tile
    b    : (1, tn)   f32
    o    : (B, tn)   f32
    """
    a = a_ref[...] * mask_ref[...]                       # dropout on the h part
    acc = jnp.dot(a.astype(w_ref.dtype), w_ref[...],
                  preferred_element_type=jnp.float32)     # single MXU pass
    o_ref[...] = jnp.tanh(acc + b_ref[...]).astype(o_ref.dtype)


def pack_rnn_cell_weights(wx, wh, bh, *, compute_dtype=jnp.bfloat16):
    """Hoisted, one-time weight packing.

    wx: (H, E)  PyTorch nn.Linear layout (out, in), no bias
    wh: (H, H)  PyTorch nn.Linear layout
    bh: (H,)
    Returns (W_packed (E+H, H) compute_dtype, b (1, H) f32).
      [x, h] @ W_packed == x @ wx.T + h @ wh.T
    """
    w_packed = jnp.concatenate([wx, wh], axis=1).T.astype(compute_dtype)
    b = bh.reshape(1, -1).astype(jnp.float32)
    return w_packed, b


def _choose_tn(H):
    for tn in (512, 256, 128):
        if H % tn == 0:
            return tn
    return H  # fall back to a single full-width block


def rnn_cell_forward(x, h, w_packed, b_packed, *,
                     dp_keep_prob, dropout_rng=None, training=True, tn=None):
    """Forward pass of the RNNCell.

    x        : (B, E) f32
    h        : (B, H) f32
    w_packed : (E+H, H) bf16 (from pack_rnn_cell_weights)
    b_packed : (1, H) f32
    """
    B, E = x.shape
    Hin = h.shape[1]
    EH, H = w_packed.shape
    assert EH == E + Hin and Hin == H and b_packed.shape == (1, H)

    keep = float(dp_keep_prob)
    if training and keep < 1.0:
        if dropout_rng is None:
            dropout_rng = jax.random.PRNGKey(0)
        keep_bits = jax.random.bernoulli(dropout_rng, p=keep, shape=(B, Hin))
        h_mask = keep_bits.astype(jnp.float32) * (1.0 / keep)   # inverted dropout
    else:
        h_mask = jnp.ones((B, Hin), jnp.float32)

    a = jnp.concatenate([x, h], axis=1).astype(jnp.float32)               # (B, E+H)
    mask = jnp.concatenate([jnp.ones((B, E), jnp.float32), h_mask], 1)    # (B, E+H)

    if tn is None:
        tn = _choose_tn(H)
    grid = (H // tn,)

    return pl.pallas_call(
        rnn_cell_kernel,
        out_shape=jax.ShapeDtypeStruct((B, H), jnp.float32),
        grid=grid,
        in_specs=[
            pl.BlockSpec((B, EH), lambda j: (0, 0)),    # [x, h]   (full, resident)
            pl.BlockSpec((B, EH), lambda j: (0, 0)),    # dropout mask
            pl.BlockSpec((EH, tn), lambda j: (0, j)),   # packed weights, bf16 tile
            pl.BlockSpec((1, tn), lambda j: (0, j)),    # bias tile
        ],
        out_specs=pl.BlockSpec((B, tn), lambda j: (0, j)),
        compiler_params=pltpu.CompilerParams(
            dimension_semantics=("parallel",)),          # v7x: 2 TCs split over H
    )(a, mask, w_packed, b_packed)


if __name__ == "__main__":
    # Small shapes consistent with the module's forward: x (B, E), h (B, H).
    B, E, H = 8, 64, 128
    dp_keep_prob = 0.8

    key = jax.random.PRNGKey(0)
    kx, kh, kwx, kwh, kb, kdrop = jax.random.split(key, 6)

    # init_weights_uniform: U(-k, k), k = sqrt(1/H); PyTorch (out, in) layout.
    k = float(jnp.sqrt(1.0 / H))
    Wx = jax.random.uniform(kwx, (H, E), jnp.float32, minval=-k, maxval=k)
    Wh = jax.random.uniform(kwh, (H, H), jnp.float32, minval=-k, maxval=k)
    bh = jax.random.uniform(kb, (H,), jnp.float32, minval=-k, maxval=k)

    x = jax.random.normal(kx, (B, E), jnp.float32)
    h = jax.random.normal(kh, (B, H), jnp.float32)

    # One-time weight packing (hoist this out of any time loop).
    W_packed, b_packed = pack_rnn_cell_weights(Wx, Wh, bh)

    # --- training mode (dropout active) ---
    h_train = rnn_cell_forward(x, h, W_packed, b_packed,
                               dp_keep_prob=dp_keep_prob,
                               dropout_rng=kdrop, training=True)
    jax.block_until_ready(h_train)

    # Reference with the identical dropout mask (same key/p/shape).
    keep_bits = jax.random.bernoulli(kdrop, p=dp_keep_prob, shape=(B, H))
    h_dropped = h * keep_bits.astype(jnp.float32) / dp_keep_prob
    ref_train = jnp.tanh(x @ Wx.T + h_dropped @ Wh.T + bh)
    assert h_train.shape == (B, H)
    assert jnp.allclose(h_train, ref_train, atol=3e-2, rtol=3e-2), "train-mode mismatch"

    # --- eval mode (dropout = identity) ---
    h_eval = rnn_cell_forward(x, h, W_packed, b_packed,
                              dp_keep_prob=dp_keep_prob, training=False)
    jax.block_until_ready(h_eval)
    ref_eval = jnp.tanh(x @ Wx.T + h @ Wh.T + bh)
    assert jnp.allclose(h_eval, ref_eval, atol=3e-2, rtol=3e-2), "eval-mode mismatch"

    print("KERNEL_OK")
</pallas_src>

<mosaic_0001>
module attributes {stable_mosaic.version = 11 : i64} {
  func.func @rnn_cell_kernel(%arg0: i32, %arg1: memref<8x192xf32, #tpu.memory_space<vmem>>, %arg2: memref<8x192xf32, #tpu.memory_space<vmem>>, %arg3: memref<192x128xbf16, #tpu.memory_space<vmem>>, %arg4: memref<1x128xf32, #tpu.memory_space<vmem>>, %arg5: memref<8x128xf32, #tpu.memory_space<vmem>>) attributes {dimension_semantics = [#tpu.dimension_semantics<parallel>], iteration_bounds = array<i64: 1>, scalar_prefetch = 0 : i64, scratch_operands = 0 : i64, tpu.core_type = #tpu.core_type<tc>, window_params = [{pipeline_mode = #tpu.pipeline_mode<synchronous>, transform_indices = @transform_0, window_bounds = array<i64: 8, 192>}, {pipeline_mode = #tpu.pipeline_mode<synchronous>, transform_indices = @transform_1, window_bounds = array<i64: 8, 192>}, {transform_indices = @transform_2, window_bounds = array<i64: 192, 128>}, {transform_indices = @transform_3, window_bounds = array<i64: 1, 128>}, {transform_indices = @transform_4, window_bounds = array<i64: 8, 128>}]} {
    %c0 = arith.constant 0 : index
    %c0_0 = arith.constant 0 : index
    %0 = vector.load %arg1[%c0, %c0_0] : memref<8x192xf32, #tpu.memory_space<vmem>>, vector<8x192xf32>
    %c0_1 = arith.constant 0 : index
    %c0_2 = arith.constant 0 : index
    %1 = vector.load %arg2[%c0_1, %c0_2] : memref<8x192xf32, #tpu.memory_space<vmem>>, vector<8x192xf32>
    %2 = arith.mulf %0, %1 : vector<8x192xf32>
    %3 = arith.truncf %2 : vector<8x192xf32> to vector<8x192xbf16>
    %c0_3 = arith.constant 0 : index
    %c0_4 = arith.constant 0 : index
    %4 = vector.load %arg3[%c0_3, %c0_4] : memref<192x128xbf16, #tpu.memory_space<vmem>>, vector<192x128xbf16>
    %cst = arith.constant dense<0.000000e+00> : vector<8x128xf32>
    %5 = tpu.matmul %3, %4, %cst {dimension_numbers = #tpu.dot_dimension_numbers<[1], [0], [0], [1], [0, 0, 1, 1], [], []>} : vector<8x192xbf16>, vector<192x128xbf16>, vector<8x128xf32> -> vector<8x128xf32>
    %c0_5 = arith.constant 0 : index
    %c0_6 = arith.constant 0 : index
    %6 = vector.load %arg4[%c0_5, %c0_6] : memref<1x128xf32, #tpu.memory_space<vmem>>, vector<1x128xf32>
    %7 = vector.broadcast %6 : vector<1x128xf32> to vector<8x128xf32>
    %8 = arith.addf %5, %7 : vector<8x128xf32>
    %9 = math.tanh %8 : vector<8x128xf32>
    %c0_7 = arith.constant 0 : index
    %c0_8 = arith.constant 0 : index
    %10 = vector.load %arg5[%c0_7, %c0_8] : memref<8x128xf32, #tpu.memory_space<vmem>>, vector<8x128xf32>
    tpu.vector_store %arg5[%c0_7, %c0_8], %9 {strides = array<i32>} : memref<8x128xf32, #tpu.memory_space<vmem>>, vector<8x128xf32>,
    return
  }
  func.func @transform_0(%arg0: i32) -> (i32, i32) {
    %c0_i32 = arith.constant 0 : i32
    %c0_i32_0 = arith.constant 0 : i32
    %c0_i32_1 = arith.constant 0 : i32
    return %c0_i32, %c0_i32_0 : i32, i32
  }
  func.func @transform_1(%arg0: i32) -> (i32, i32) {
    %c0_i32 = arith.constant 0 : i32
    %c0_i32_0 = arith.constant 0 : i32
    %c0_i32_1 = arith.constant 0 : i32
    return %c0_i32, %c0_i32_0 : i32, i32
  }
  func.func @transform_2(%arg0: i32) -> (i32, i32) {
    %c0_i32 = arith.constant 0 : i32
    %c0_i32_0 = arith.constant 0 : i32
    return %c0_i32, %arg0 : i32, i32
  }
  func.func @transform_3(%arg0: i32) -> (i32, i32) {
    %c0_i32 = arith.constant 0 : i32
    %c0_i32_0 = arith.constant 0 : i32
    return %c0_i32, %arg0 : i32, i32
  }
  func.func @transform_4(%arg0: i32) -> (i32, i32) {
    %c0_i32 = arith.constant 0 : i32
    %c0_i32_0 = arith.constant 0 : i32
    return %c0_i32, %arg0 : i32, i32
  }
}

</mosaic_0001>

<bundles_post_ra>
// kernel: tpu_custom_call.1
= control target key start
LH: loop header
LB: loop body
LE: loop exit
PB: predicated region body
PF: predicated region fallthrough
CT: control target
= control target key end

     0   :  { %9 = vsyncpa [#allocation3], 0  ;;  %s397_s0 = inlined_call_operand.hbm [shape: f32[8,192], index: 0, kind: input, shape index: {}]   ;;  %s398_s1 = inlined_call_operand.hbm [shape: f32[8,192], index: 1, kind: input, shape index: {}]   ;;  %s399_s2 = inlined_call_operand.hbm [shape: bf16[192,128], index: 2, kind: input, shape index: {}]   ;;  %s400_s3 = inlined_call_operand.vmem [shape: f32[1,128], index: 3, kind: input, shape index: {}]   ;;  %s401_s4 = inlined_call_operand.hbm [shape: f32[8,128], index: 4, kind: output, shape index: {}]  }
   0x1   :  { %10 = vsyncpa [#allocation6], 0 }
   0x2   :  { %11 = vsyncpa [#allocation4], 0  ;;  %s350_s15 = smov [#allocation5]   ;;  %s351_s17 = smov [#allocation2]  }
   0x3   :  { %s28_s16 = sshll.u32 %s350_s15, 4  ;;  %s18_s18 = sshll.u32 %s351_s17, 4  ;;  %s29_s16 = int_to_ptr.vmem [resolvable:$true] %s28_s16  ;;  %s19_s18 = int_to_ptr.vmem [resolvable:$true] %s18_s18 }
   0x4   :  { %s272_s19 = scalar_lea.vmem %s29_s16, 256  ;;  %p277_p1 = scmp.lt.s32.totalorder %s29_s16, %s29_s16 }
   0x5   :  { %p273_p0 = scmp.ne.s32.totalorder %s29_s16, %s272_s19  ;;  %p278_p2 = scmp.lt.s32.totalorder %s272_s19, %s272_s19 }
   0x7   :  { %p279_p3 = por %p278_p2, %p277_p1 }
   0x9   :  { %p280_p4 = pnand %p279_p3, %p273_p0 }
   0xb   :  { %283 = shalt.err (!%p280_p4)
}
   0xc   :  { %31 = dma.hbm_to_vmem [thread:$0]  %s398_s1, 256, %s29_s16, [#allocation6]  }
   0xd   :  { %s292_s22 = scalar_lea.vmem %s19_s18, 256  ;;  %p297_p6 = scmp.lt.s32.totalorder %s19_s18, %s19_s18 }
   0xe   :  { %p293_p5 = scmp.ne.s32.totalorder %s19_s18, %s292_s22  ;;  %p298_p7 = scmp.lt.s32.totalorder %s292_s22, %s292_s22 }
  0x10   :  { %p299_p8 = por %p298_p7, %p297_p6 }
  0x12   :  { %p300_p9 = pnand %p299_p8, %p293_p5 }
  0x14   :  { %303 = shalt.err (!%p300_p9)
}
  0x15   :  { %21 = dma.hbm_to_vmem [thread:$0]  %s397_s0, 256, %s19_s18, [#allocation3]  }
  0x16   :  { %s352_s25 = smov [#allocation7]  }
  0x17   :  { %s37_s26 = sshll.u32 %s352_s25, 4  ;;  %s38_s26 = int_to_ptr.vmem [resolvable:$true] %s37_s26 }
  0x18   :  { %s312_s27 = scalar_lea.vmem %s38_s26, 1536  ;;  %p317_p11 = scmp.lt.s32.totalorder %s38_s26, %s38_s26 }
  0x19   :  { %p313_p10 = scmp.ne.s32.totalorder %s38_s26, %s312_s27  ;;  %p318_p12 = scmp.lt.s32.totalorder %s312_s27, %s312_s27 }
  0x1b   :  { %p319_p13 = por %p318_p12, %p317_p11 }
  0x1d   :  { %p320_p0 = pnand %p319_p13, %p313_p10 }
  0x1f   :  { %323 = shalt.err (!%p320_p0)
}
  0x20   :  { %s353_s1 = smov 64   ;;  %s354_s28 = smov 4  }
  0x21   :  { %43 = dma.hbm_to_vmem [thread:$0]  %s399_s2, 1536, %s38_s26, [#allocation6], %s353_s1, %s353_s1, %s354_s28  }
  0x22   :  { %344 = dma.done.wait [#allocation3], 256  }
  0x23   :  { %345 = vsyncadd [#allocation3], 4294967040 }
  0x24   :  { %346 = dma.done.wait [#allocation6], 1792  }
  0x25   :  { %347 = vsyncadd [#allocation6], 4294965504  ;;  %v355_v0 = vmov 0   ;;  %v250_v1 = vld [vmem:[#allocation7 + $0x38] sm:$0xff]   ;;  %v251_v2 = vld [vmem:[#allocation7 + $0x30] sm:$0xff]   ;;  %vm167_vm0 = vcmask 523264  }
  0x26   :  { %171 = vmatprep.subr.bf16.mxu0 %v355_v0  ;;  %v252_v3 = vld [vmem:[#allocation7 + $0x28] sm:$0xff]   ;;  %v253_v4 = vld [vmem:[#allocation7 + $0x20] sm:$0xff]   ;;  %v59_v6 = vld [vmem:[#allocation5 + $0x8] sm:$0xff]  ;;  %s356_s5 = smov [#allocation8]  }
  0x27   :  { %172 = vmatpush1.bf16.msra.mxu0 %v250_v1  ;;  %v57_v5 = vld [vmem:[#allocation2 + $0x8] sm:$0xff]  ;;  %v254_v8 = vld [vmem:[#allocation7 + $0x18] sm:$0xff]   ;;  %v255_v10 = vld [vmem:[#allocation7 + $0x10] sm:$0xff]   ;;  %s219_s6 = sshll.u32 %s356_s5, 4  ;;  %s220_s6 = int_to_ptr.vmem [resolvable:$true] %s219_s6 }
  0x28   :  { %173 = vmatprep.subr.bf16.mxu0 %v355_v0  ;;  %v61_v7 = vmul.f32 %v59_v6, %v57_v5  ;;  %v256_v11 = vld [vmem:[#allocation7 + $0x8] sm:$0xff]   ;;  %v257_v12 = vld [vmem:[#allocation7] sm:$0xff]   ;;  %v258_v13 = vld [vmem:[#allocation7 + $0x58] sm:$0xff]   ;;  %s324_s7 = scalar_lea.vmem %s220_s6, 128  ;;  %p329_p2 = scmp.lt.s32.totalorder %s220_s6, %s220_s6 }
  0x29   :  { %v259_v14 = vld [vmem:[#allocation7 + $0x50] sm:$0xff]   ;;  %v260_v15 = vld [vmem:[#allocation7 + $0x48] sm:$0xff]   ;;  %v56_v16 = vld [vmem:[#allocation2] sm:$0xff]  ;;  %p325_p1 = scmp.ne.s32.totalorder %s220_s6, %s324_s7  ;;  %p330_p3 = scmp.lt.s32.totalorder %s324_s7, %s324_s7 }
  0x2a   :  { %v63_v9 = vpack.c.bf16 %v61_v7, %v61_v7  ;;  %v58_v17 = vld [vmem:[#allocation5] sm:$0xff]  ;;  %v261_v19 = vld [vmem:[#allocation7 + $0x40] sm:$0xff]  }
  0x2b   :  { %174 = vmatpush1.bf16.msra.mxu0 %v251_v2  ;;  %v60_v18 = vmul.f32 %v58_v17, %v56_v16  ;;  %v229_v21 = vld [vmem:[%s400_s3] ss:$0 sm:$0xff]  ;;  %p331_p4 = por %p330_p3, %p329_p2 }
  0x2c   :  { %175 = vmatprep.subr.bf16.mxu0 %v355_v0  ;;  %242 = vmatprep.mubr.msk.bf16.mxu0 %vm167_vm0, %v63_v9 }
  0x2d   :  { %v62_v20 = vpack.c.bf16 %v60_v18, %v60_v18  ;;  %p332_p5 = pnand %p331_p4, %p325_p1 }
  0x2f   :  { %176 = vmatpush1.bf16.msra.mxu0 %v252_v3 }
  0x30   :  { %177 = vmatprep.subr.bf16.mxu0 %v355_v0 }
  0x33   :  { %178 = vmatpush1.bf16.msra.mxu0 %v253_v4 }
  0x34   :  { %179 = vmatprep.subr.bf16.mxu0 %v355_v0 }
  0x37   :  { %180 = vmatpush1.bf16.msra.mxu0 %v254_v8 }
  0x38   :  { %181 = vmatprep.subr.bf16.mxu0 %v355_v0 }
  0x3b   :  { %182 = vmatpush1.bf16.msra.mxu0 %v255_v10 }
  0x3c   :  { %183 = vmatprep.subr.bf16.mxu0 %v355_v0 }
  0x3f   :  { %184 = vmatpush1.bf16.msra.mxu0 %v256_v11 }
  0x40   :  { %185 = vmatprep.subr.bf16.mxu0 %v355_v0 }
  0x43   :  { %186 = vmatpush1.bf16.msra.mxu0 %v257_v12 }
  0x44   :  { %195 = vmatprep.subr.bf16.mxu0 %v355_v0 }
  0x47   :  { %196 = vmatpush2.bf16.msra.mxu0 %v258_v13 }
  0x48   :  { %197 = vmatprep.subr.bf16.mxu0 %v355_v0 }
  0x4b   :  { %198 = vmatpush2.bf16.msra.mxu0 %v259_v14 }
  0x4c   :  { %199 = vmatprep.subr.bf16.mxu0 %v355_v0 }
  0x4f   :  { %200 = vmatpush2.bf16.msra.mxu0 %v260_v15 }
  0x50   :  { %201 = vmatprep.subr.bf16.mxu0 %v355_v0 }
  0x53   :  { %202 = vmatpush2.bf16.msra.mxu0 %v261_v19 }
  0x56   :  { %204 = vmatmul.mubr.bf16.vlgmr.msra.gmra.mxu0 %v62_v20 }
 0x116   :  { %v205_v22 = vpop.f32.mrf.mxu0 }
 0x117   :  { %v206_v23 = vadd.f32 %v229_v21, %v205_v22 }
 0x118   :  { %v207_v24 = vpop.f32.mrf.mxu0 }
 0x119   :  { %262 = vtanh.f32 %v206_v23 }
 0x11a   :  { %v208_v25 = vpop.f32.mrf.mxu0 }
 0x11c   :  { %v209_v26 = vpop.f32.mrf.mxu0 }
 0x126   :  { %v263_v27 = vpop.eup %262 }
 0x127   :  { %212 = vst [vmem:[#allocation8] sm:$0xff] %v263_v27 }
 0x128   :  { %335 = shalt.err (!%p332_p5)
}
 0x129   :  { %222 = dma.vmem_to_hbm [thread:$0]  %s220_s6, 128, %s401_s4, [#allocation4]  }
 0x12a   :  { %348 = dma.done.wait [#allocation4], 128  }
 0x12b   :  { %349 = vsyncadd [#allocation4], 4294967168 }
 0x12c   :  { %226 = vsyncpa [#allocation3], 1 }
 0x12d   :  { %227 = vsyncpa [#allocation6], 1 }
 0x12e   :  { %228 = vsyncpa [#allocation4], 1 }

</bundles_post_ra>
